<compile_context>
chip_gen: v7x
topology: tpu7x:2x2x1
jax: 0.10.0
libtpu: 0.0.40
codegen_flags: <defaults>
</compile_context>

<pallas_src>
import functools

import jax
import jax.numpy as jnp
from jax.experimental import pallas as pl
from jax.experimental.pallas import tpu as pltpu

_LANE = 128     # last-dim (lane) granularity
_SUBLANE = 8    # second-to-last (sublane) granularity for f32
_VMEM_BUDGET = 64 * 1024 * 1024   # conservative (v7x has 64 MiB / TC)


def _round_up(x: int, m: int) -> int:
    return (x + m - 1) // m * m


def _make_mlp_kernel(num_layers: int, last_layer: str, out_dim: int, out_pad: int):
    """Fused kernel: all Linear layers + activations for one batch tile."""

    def kernel(x_ref, *refs):
        # refs = (w0, b0, w1, b1, ..., w_{L-1}, b_{L-1}, out_ref)
        out_ref = refs[-1]
        h = x_ref[...]                                    # (TB, in_pad), compute dtype
        for l in range(num_layers):
            w = refs[2 * l][...]                          # (in_pad_l, out_pad_l)
            b = refs[2 * l + 1][...]                      # (1, out_pad_l), f32
            # f32 accumulation on the MXU regardless of the input dtype.
            h = jnp.dot(h, w, preferred_element_type=jnp.float32) + b
            if l < num_layers - 1:
                h = jnp.maximum(h, 0.0)                   # ReLU (Dropout: identity, eval)
                h = h.astype(w.dtype)                     # back to compute dtype for MXU

        # Epilogue in f32 on the lane-padded (TB, out_pad) slab.
        if last_layer == 'softmax':
            if out_pad != out_dim:
                lane = jax.lax.broadcasted_iota(jnp.int32, h.shape, 1)
                h = jnp.where(lane < out_dim, h, -1e30)   # mask padded lanes
            m = jnp.max(h, axis=1, keepdims=True)
            e = jnp.exp(h - m)
            denom = jnp.sum(e, axis=1, keepdims=True)
            h = e * pl.reciprocal(denom, approx=True)     # EUP vrcp, ~free
        elif last_layer == 'relu':
            h = jnp.maximum(h, 0.0)
        elif last_layer == 'tanh':
            h = jnp.tanh(h)
        elif last_layer == 'sigmoid':
            h = jax.nn.sigmoid(h)
        # else: identity

        out_ref[...] = h.astype(out_ref.dtype)

    return kernel


def _choose_batch_tile(B: int, dims_p, resident_bytes: int,
                       block_batch: int, itemsize: int) -> int:
    """Largest batch tile (multiple of 8, <= block_batch) fitting the VMEM budget."""
    cap = min(int(block_batch), _round_up(B, _SUBLANE))
    cap = max(_SUBLANE, _round_up(cap, _SUBLANE))
    # per-row VMEM: double-buffered input + output tiles + largest live activation
    per_row = (2 * dims_p[0] * itemsize          # x tile, double buffered
               + 2 * dims_p[-1] * 4              # out tile (f32), double buffered
               + 3 * max(dims_p) * 4)            # in-flight activations (f32, slack)
    avail = _VMEM_BUDGET - 2 * resident_bytes - (4 << 20)
    if avail <= 0:
        return _SUBLANE
    tb = min(cap, max(_SUBLANE, (avail // per_row) // _SUBLANE * _SUBLANE))
    return int(tb)


def mlp_forward(x, weights, biases, last_layer='softmax',
                block_batch=512, compute_dtype=jnp.float32):
    """x: (B, layer_sizes[0]); weights[l]: (in_l, out_l); biases[l]: (out_l,)."""
    num_layers = len(weights)
    B, d_in = x.shape
    out_dim = weights[-1].shape[1]
    cdt = jnp.dtype(compute_dtype)

    # ---- lane-pad feature dims, sublane-pad the batch -----------------------
    dims = [d_in] + [w.shape[1] for w in weights]
    dims_p = [_round_up(d, _LANE) for d in dims]
    out_pad = dims_p[-1]

    resident = (sum(dims_p[l] * dims_p[l + 1] * cdt.itemsize for l in range(num_layers))
                + sum(dims_p[l + 1] * 4 for l in range(num_layers)))

    TB = _choose_batch_tile(B, dims_p, resident, block_batch, cdt.itemsize)
    Bp = _round_up(max(B, 1), TB)

    xp = jnp.zeros((Bp, dims_p[0]), cdt).at[:B, :d_in].set(x.astype(cdt))
    ws_p, bs_p = [], []
    for l, (w, b) in enumerate(zip(weights, biases)):
        wp = (jnp.zeros((dims_p[l], dims_p[l + 1]), cdt)
              .at[:w.shape[0], :w.shape[1]].set(w.astype(cdt)))
        bp = (jnp.zeros((1, dims_p[l + 1]), jnp.float32)
              .at[0, :b.shape[0]].set(b.astype(jnp.float32)))
        ws_p.append(wp)
        bs_p.append(bp)

    # ---- specs: x/out tiled over the batch grid, weights/biases resident ----
    operands = [xp]
    in_specs = [pl.BlockSpec((TB, dims_p[0]), lambda i: (i, 0))]
    for wp, bp in zip(ws_p, bs_p):
        operands.append(wp)
        in_specs.append(pl.BlockSpec(wp.shape, lambda i: (0, 0)))   # resident
        operands.append(bp)
        in_specs.append(pl.BlockSpec(bp.shape, lambda i: (0, 0)))   # resident
    out_spec = pl.BlockSpec((TB, out_pad), lambda i: (i, 0))

    grid = (Bp // TB,)

    # ---- VMEM budget + cost estimate ----------------------------------------
    tile_io = 2 * TB * dims_p[0] * cdt.itemsize + 2 * TB * out_pad * 4
    scratch = 4 * TB * max(dims_p) * 4
    vmem_bytes = int(min(_VMEM_BUDGET,
                         max(32 * 1024 * 1024, 2 * resident + tile_io + scratch)))

    flops = 2 * Bp * sum(dims_p[l] * dims_p[l + 1] for l in range(num_layers))
    bytes_accessed = (xp.size * xp.dtype.itemsize + resident + Bp * out_pad * 4)
    transcendentals = Bp * out_pad if last_layer in ('softmax', 'tanh', 'sigmoid') else 0

    kernel = _make_mlp_kernel(num_layers, last_layer, out_dim, out_pad)

    out_padded = pl.pallas_call(
        kernel,
        out_shape=jax.ShapeDtypeStruct((Bp, out_pad), jnp.float32),
        grid=grid,
        in_specs=in_specs,
        out_specs=out_spec,
        compiler_params=pltpu.CompilerParams(
            dimension_semantics=("parallel",),
            vmem_limit_bytes=vmem_bytes),
        cost_estimate=pl.CostEstimate(
            flops=flops,
            transcendentals=transcendentals,
            bytes_accessed=bytes_accessed),
    )(*operands)

    # slice off batch / lane padding (free layout plumbing outside the kernel)
    return out_padded[:B, :out_dim]


def init_mlp_params(key, layer_sizes):
    """Deterministic init matching nn.Linear's U(-1/sqrt(fan_in), 1/sqrt(fan_in))."""
    weights, biases = [], []
    for l in range(len(layer_sizes) - 1):
        fan_in, fan_out = layer_sizes[l], layer_sizes[l + 1]
        key, kw, kb = jax.random.split(key, 3)
        bound = 1.0 / jnp.sqrt(fan_in)
        # stored as (in, out) == transpose of PyTorch's (out, in)
        weights.append(jax.random.uniform(kw, (fan_in, fan_out), jnp.float32,
                                          minval=-bound, maxval=bound))
        biases.append(jax.random.uniform(kb, (fan_out,), jnp.float32,
                                         minval=-bound, maxval=bound))
    return weights, biases


def mlp_reference(x, weights, biases, last_layer='softmax'):
    h = x
    num_layers = len(weights)
    for l in range(num_layers):
        h = h @ weights[l] + biases[l]
        if l < num_layers - 1:
            h = jnp.maximum(h, 0.0)
    if last_layer == 'softmax':
        h = jax.nn.softmax(h, axis=1)
    elif last_layer == 'relu':
        h = jnp.maximum(h, 0.0)
    elif last_layer == 'tanh':
        h = jnp.tanh(h)
    elif last_layer == 'sigmoid':
        h = jax.nn.sigmoid(h)
    return h


if __name__ == "__main__":
    layer_sizes = [16, 32, 32, 8]   # MLP(layer_sizes) -> 3 Linear layers
    batch = 2

    key = jax.random.PRNGKey(0)
    key, kx = jax.random.split(key)
    x = jax.random.normal(kx, (batch, layer_sizes[0]), jnp.float32)

    weights, biases = init_mlp_params(key, layer_sizes)

    fwd = jax.jit(functools.partial(mlp_forward, last_layer='softmax'))
    out = fwd(x, weights, biases)
    jax.block_until_ready(out)

    ref = mlp_reference(x, weights, biases, last_layer='softmax')
    assert out.shape == (batch, layer_sizes[-1])
    # approx reciprocal in the softmax epilogue -> slightly looser tolerance
    assert jnp.allclose(out, ref, atol=2e-3, rtol=2e-3), "mismatch vs reference (B=2)"

    # exercise multi-tile grid + batch padding (grid > 1, padded rows sliced off)
    key, kx2 = jax.random.split(key)
    x_big = jax.random.normal(kx2, (300, layer_sizes[0]), jnp.float32)
    out_big = jax.jit(functools.partial(mlp_forward, last_layer='softmax',
                                        block_batch=128))(x_big, weights, biases)
    jax.block_until_ready(out_big)
    ref_big = mlp_reference(x_big, weights, biases, last_layer='softmax')
    assert out_big.shape == (300, layer_sizes[-1])
    assert jnp.allclose(out_big, ref_big, atol=2e-3, rtol=2e-3), "mismatch vs reference (B=300)"

    # exercise a non-softmax epilogue path as well
    out_tanh = jax.jit(functools.partial(mlp_forward, last_layer='tanh'))(x, weights, biases)
    jax.block_until_ready(out_tanh)
    ref_tanh = mlp_reference(x, weights, biases, last_layer='tanh')
    assert jnp.allclose(out_tanh, ref_tanh, atol=1e-5, rtol=1e-5), "mismatch vs reference (tanh)"

    print("KERNEL_OK")
</pallas_src>

<mosaic_0001>
module attributes {stable_mosaic.version = 11 : i64} {
  func.func @kernel(%arg0: i32, %arg1: memref<8x128xf32, #tpu.memory_space<vmem>>, %arg2: memref<128x128xf32, #tpu.memory_space<vmem>>, %arg3: memref<1x128xf32, #tpu.memory_space<vmem>>, %arg4: memref<128x128xf32, #tpu.memory_space<vmem>>, %arg5: memref<1x128xf32, #tpu.memory_space<vmem>>, %arg6: memref<128x128xf32, #tpu.memory_space<vmem>>, %arg7: memref<1x128xf32, #tpu.memory_space<vmem>>, %arg8: memref<8x128xf32, #tpu.memory_space<vmem>>) attributes {dimension_semantics = [#tpu.dimension_semantics<parallel>], iteration_bounds = array<i64: 1>, scalar_prefetch = 0 : i64, scratch_operands = 0 : i64, tpu.core_type = #tpu.core_type<tc>, window_params = [{transform_indices = @transform_0, window_bounds = array<i64: 8, 128>}, {pipeline_mode = #tpu.pipeline_mode<synchronous>, transform_indices = @transform_1, window_bounds = array<i64: 128, 128>}, {pipeline_mode = #tpu.pipeline_mode<synchronous>, transform_indices = @transform_2, window_bounds = array<i64: 1, 128>}, {pipeline_mode = #tpu.pipeline_mode<synchronous>, transform_indices = @transform_3, window_bounds = array<i64: 128, 128>}, {pipeline_mode = #tpu.pipeline_mode<synchronous>, transform_indices = @transform_4, window_bounds = array<i64: 1, 128>}, {pipeline_mode = #tpu.pipeline_mode<synchronous>, transform_indices = @transform_5, window_bounds = array<i64: 128, 128>}, {pipeline_mode = #tpu.pipeline_mode<synchronous>, transform_indices = @transform_6, window_bounds = array<i64: 1, 128>}, {transform_indices = @transform_7, window_bounds = array<i64: 8, 128>}]} {
    %c0 = arith.constant 0 : index
    %c0_0 = arith.constant 0 : index
    %0 = vector.load %arg1[%c0, %c0_0] : memref<8x128xf32, #tpu.memory_space<vmem>>, vector<8x128xf32>
    %c0_1 = arith.constant 0 : index
    %c0_2 = arith.constant 0 : index
    %1 = vector.load %arg2[%c0_1, %c0_2] : memref<128x128xf32, #tpu.memory_space<vmem>>, vector<128x128xf32>
    %c0_3 = arith.constant 0 : index
    %c0_4 = arith.constant 0 : index
    %2 = vector.load %arg3[%c0_3, %c0_4] : memref<1x128xf32, #tpu.memory_space<vmem>>, vector<1x128xf32>
    %cst = arith.constant dense<0.000000e+00> : vector<8x128xf32>
    %3 = tpu.matmul %0, %1, %cst {dimension_numbers = #tpu.dot_dimension_numbers<[1], [0], [0], [1], [0, 0, 1, 1], [], []>} : vector<8x128xf32>, vector<128x128xf32>, vector<8x128xf32> -> vector<8x128xf32>
    %4 = vector.broadcast %2 : vector<1x128xf32> to vector<8x128xf32>
    %5 = arith.addf %3, %4 : vector<8x128xf32>
    %cst_5 = arith.constant 0.000000e+00 : f32
    %6 = vector.broadcast %cst_5 : f32 to vector<8x128xf32>
    %7 = arith.maximumf %5, %6 : vector<8x128xf32>
    %c0_6 = arith.constant 0 : index
    %c0_7 = arith.constant 0 : index
    %8 = vector.load %arg4[%c0_6, %c0_7] : memref<128x128xf32, #tpu.memory_space<vmem>>, vector<128x128xf32>
    %c0_8 = arith.constant 0 : index
    %c0_9 = arith.constant 0 : index
    %9 = vector.load %arg5[%c0_8, %c0_9] : memref<1x128xf32, #tpu.memory_space<vmem>>, vector<1x128xf32>
    %cst_10 = arith.constant dense<0.000000e+00> : vector<8x128xf32>
    %10 = tpu.matmul %7, %8, %cst_10 {dimension_numbers = #tpu.dot_dimension_numbers<[1], [0], [0], [1], [0, 0, 1, 1], [], []>} : vector<8x128xf32>, vector<128x128xf32>, vector<8x128xf32> -> vector<8x128xf32>
    %11 = vector.broadcast %9 : vector<1x128xf32> to vector<8x128xf32>
    %12 = arith.addf %10, %11 : vector<8x128xf32>
    %cst_11 = arith.constant 0.000000e+00 : f32
    %13 = vector.broadcast %cst_11 : f32 to vector<8x128xf32>
    %14 = arith.maximumf %12, %13 : vector<8x128xf32>
    %c0_12 = arith.constant 0 : index
    %c0_13 = arith.constant 0 : index
    %15 = vector.load %arg6[%c0_12, %c0_13] : memref<128x128xf32, #tpu.memory_space<vmem>>, vector<128x128xf32>
    %c0_14 = arith.constant 0 : index
    %c0_15 = arith.constant 0 : index
    %16 = vector.load %arg7[%c0_14, %c0_15] : memref<1x128xf32, #tpu.memory_space<vmem>>, vector<1x128xf32>
    %cst_16 = arith.constant dense<0.000000e+00> : vector<8x128xf32>
    %17 = tpu.matmul %14, %15, %cst_16 {dimension_numbers = #tpu.dot_dimension_numbers<[1], [0], [0], [1], [0, 0, 1, 1], [], []>} : vector<8x128xf32>, vector<128x128xf32>, vector<8x128xf32> -> vector<8x128xf32>
    %18 = vector.broadcast %16 : vector<1x128xf32> to vector<8x128xf32>
    %19 = arith.addf %17, %18 : vector<8x128xf32>
    %20 = tpu.iota {dimensions = array<i32: 1>} : vector<8x128xi32>
    %c8_i32 = arith.constant 8 : i32
    %21 = vector.broadcast %c8_i32 : i32 to vector<8x128xi32>
    %22 = arith.cmpi slt, %20, %21 : vector<8x128xi32>
    %cst_17 = arith.constant -1.000000e+30 : f32
    %23 = vector.broadcast %cst_17 : f32 to vector<8x128xf32>
    %24 = arith.select %22, %19, %23 : vector<8x128xi1>, vector<8x128xf32>
    %cst_18 = arith.constant dense<0xFF800000> : vector<8xf32>
    %25 = vector.multi_reduction <maximumf>, %24, %cst_18 [1] : vector<8x128xf32> to vector<8xf32>
    %26 = vector.shape_cast %25 : vector<8xf32> to vector<8x1xf32>
    %27 = vector.broadcast %26 : vector<8x1xf32> to vector<8x128xf32>
    %28 = arith.subf %24, %27 : vector<8x128xf32>
    %29 = math.exp %28 : vector<8x128xf32>
    %cst_19 = arith.constant dense<0.000000e+00> : vector<8xf32>
    %30 = vector.multi_reduction <add>, %29, %cst_19 [1] : vector<8x128xf32> to vector<8xf32>
    %31 = vector.shape_cast %30 : vector<8xf32> to vector<8x1xf32>
    %32 = tpu.reciprocal %31 {approx = true} : vector<8x1xf32> -> vector<8x1xf32>
    %33 = vector.broadcast %32 : vector<8x1xf32> to vector<8x128xf32>
    %34 = arith.mulf %29, %33 : vector<8x128xf32>
    %c0_20 = arith.constant 0 : index
    %c0_21 = arith.constant 0 : index
    %35 = vector.load %arg8[%c0_20, %c0_21] : memref<8x128xf32, #tpu.memory_space<vmem>>, vector<8x128xf32>
    tpu.vector_store %arg8[%c0_20, %c0_21], %34 {strides = array<i32>} : memref<8x128xf32, #tpu.memory_space<vmem>>, vector<8x128xf32>,
    return
  }
  func.func @transform_0(%arg0: i32) -> (i32, i32) {
    %c0_i32 = arith.constant 0 : i32
    %c0_i32_0 = arith.constant 0 : i32
    return %arg0, %c0_i32 : i32, i32
  }
  func.func @transform_1(%arg0: i32) -> (i32, i32) {
    %c0_i32 = arith.constant 0 : i32
    %c0_i32_0 = arith.constant 0 : i32
    %c0_i32_1 = arith.constant 0 : i32
    return %c0_i32, %c0_i32_0 : i32, i32
  }
  func.func @transform_2(%arg0: i32) -> (i32, i32) {
    %c0_i32 = arith.constant 0 : i32
    %c0_i32_0 = arith.constant 0 : i32
    %c0_i32_1 = arith.constant 0 : i32
    return %c0_i32, %c0_i32_0 : i32, i32
  }
  func.func @transform_3(%arg0: i32) -> (i32, i32) {
    %c0_i32 = arith.constant 0 : i32
    %c0_i32_0 = arith.constant 0 : i32
    %c0_i32_1 = arith.constant 0 : i32
    return %c0_i32, %c0_i32_0 : i32, i32
  }
  func.func @transform_4(%arg0: i32) -> (i32, i32) {
    %c0_i32 = arith.constant 0 : i32
    %c0_i32_0 = arith.constant 0 : i32
    %c0_i32_1 = arith.constant 0 : i32
    return %c0_i32, %c0_i32_0 : i32, i32
  }
  func.func @transform_5(%arg0: i32) -> (i32, i32) {
    %c0_i32 = arith.constant 0 : i32
    %c0_i32_0 = arith.constant 0 : i32
    %c0_i32_1 = arith.constant 0 : i32
    return %c0_i32, %c0_i32_0 : i32, i32
  }
  func.func @transform_6(%arg0: i32) -> (i32, i32) {
    %c0_i32 = arith.constant 0 : i32
    %c0_i32_0 = arith.constant 0 : i32
    %c0_i32_1 = arith.constant 0 : i32
    return %c0_i32, %c0_i32_0 : i32, i32
  }
  func.func @transform_7(%arg0: i32) -> (i32, i32) {
    %c0_i32 = arith.constant 0 : i32
    %c0_i32_0 = arith.constant 0 : i32
    return %arg0, %c0_i32 : i32, i32
  }
}

</mosaic_0001>

<bundles_post_ra>
// kernel: mlp_forward.1
= control target key start
LH: loop header
LB: loop body
LE: loop exit
PB: predicated region body
PF: predicated region fallthrough
CT: control target
= control target key end

     0   :  { %v564_v0 = vmov 0.0|0.0   ;;  %vm565_vm0 = vmmov 0   ;;  %v566_v4 = vmov 0.0   ;;  %s796_s1 = inlined_call_operand.vmem [shape: f32[128,128], index: 1, kind: input, shape index: {}]   ;;  %s797_s3 = inlined_call_operand.vmem [shape: f32[128,128], index: 3, kind: input, shape index: {}]   ;;  %s798_s0 = inlined_call_operand.vmem [shape: f32[8,128], index: 0, kind: input, shape index: {}]   ;;  %s799_s5 = inlined_call_operand.vmem [shape: f32[128,128], index: 5, kind: input, shape index: {}]   ;;  %s800_s2 = inlined_call_operand.vmem [shape: f32[1,128], index: 2, kind: input, shape index: {}]   ;;  %s801_s4 = inlined_call_operand.vmem [shape: f32[1,128], index: 4, kind: input, shape index: {}]   ;;  %s802_s6 = inlined_call_operand.vmem [shape: f32[1,128], index: 6, kind: input, shape index: {}]   ;;  %s803_s7 = inlined_call_operand.vmem [shape: f32[8,128], index: 7, kind: output, shape index: {}]  }
   0x1   :  { %485 = vmatprep.subr.bf16.mxu0 %v564_v0  ;;  %v27_v1 = vld [vmem:[%s796_s1] sm:$0xff]  ;;  %v28_v2 = vld [vmem:[%s796_s1 + $0x8] sm:$0xff]  ;;  %v29_v3 = vld [vmem:[%s796_s1 + $0x10] sm:$0xff]  ;;  %412 = vmatprep.mubr.msk.f32.mxu0 %vm565_vm0, %v566_v4 }
   0x2   :  { %v486_v5 = vpack.c.bf16 %v28_v2, %v27_v1  ;;  %v30_v6 = vld [vmem:[%s796_s1 + $0x18] sm:$0xff]  ;;  %509 = vmatprep.subr.bf16.mxu1 %v564_v0  ;;  %447 = vmatprep.mubr.msk.f32.mxu1 %vm565_vm0, %v566_v4  ;;  %v31_v8 = vld [vmem:[%s796_s1 + $0x20] sm:$0xff]  ;;  %v32_v9 = vld [vmem:[%s796_s1 + $0x28] sm:$0xff] }
   0x3   :  { %v489_v7 = vpack.c.bf16 %v30_v6, %v29_v3  ;;  %v121_v10 = vld [vmem:[%s797_s3] sm:$0xff]  ;;  %v122_v11 = vld [vmem:[%s797_s3 + $0x8] sm:$0xff]  ;;  %v123_v12 = vld [vmem:[%s797_s3 + $0x10] sm:$0xff]  ;;  %v492_v14 = vpack.c.bf16 %v32_v9, %v31_v8 }
   0x4   :  { %487 = vmatpush3.bf16.msra.mxu0 %v486_v5  ;;  %v124_v13 = vld [vmem:[%s797_s3 + $0x18] sm:$0xff]  ;;  %v510_v15 = vpack.c.bf16 %v122_v11, %v121_v10  ;;  %v33_v16 = vld [vmem:[%s796_s1 + $0x30] sm:$0xff]  ;;  %v125_v19 = vld [vmem:[%s797_s3 + $0x20] sm:$0xff] }
   0x5   :  { %488 = vmatprep.subr.bf16.mxu0 %v564_v0  ;;  %v34_v17 = vld [vmem:[%s796_s1 + $0x38] sm:$0xff]  ;;  %v513_v18 = vpack.c.bf16 %v124_v13, %v123_v12  ;;  %v126_v20 = vld [vmem:[%s797_s3 + $0x28] sm:$0xff]  ;;  %v35_v22 = vld [vmem:[%s796_s1 + $0x40] sm:$0xff] }
   0x6   :  { %511 = vmatpush3.bf16.msra.mxu1 %v510_v15  ;;  %v495_v21 = vpack.c.bf16 %v34_v17, %v33_v16  ;;  %v36_v23 = vld [vmem:[%s796_s1 + $0x48] sm:$0xff]  ;;  %v516_v24 = vpack.c.bf16 %v126_v20, %v125_v19  ;;  %v127_v25 = vld [vmem:[%s797_s3 + $0x30] sm:$0xff]  ;;  %v128_v26 = vld [vmem:[%s797_s3 + $0x38] sm:$0xff] }
   0x7   :  { %512 = vmatprep.subr.bf16.mxu1 %v564_v0  ;;  %v498_v27 = vpack.c.bf16 %v36_v23, %v35_v22  ;;  %v37_v28 = vld [vmem:[%s796_s1 + $0x50] sm:$0xff]  ;;  %v38_v29 = vld [vmem:[%s796_s1 + $0x58] sm:$0xff]  ;;  %v519_v30 = vpack.c.bf16 %v128_v26, %v127_v25  ;;  %v129_v31 = vld [vmem:[%s797_s3 + $0x40] sm:$0xff] }
   0x8   :  { %490 = vmatpush3.bf16.msra.mxu0 %v489_v7  ;;  %v130_v32 = vld [vmem:[%s797_s3 + $0x48] sm:$0xff]  ;;  %v501_v33 = vpack.c.bf16 %v38_v29, %v37_v28  ;;  %v39_v34 = vld [vmem:[%s796_s1 + $0x60] sm:$0xff]  ;;  %v131_v37 = vld [vmem:[%s797_s3 + $0x50] sm:$0xff] }
   0x9   :  { %491 = vmatprep.subr.bf16.mxu0 %v564_v0  ;;  %v40_v35 = vld [vmem:[%s796_s1 + $0x68] sm:$0xff]  ;;  %v522_v36 = vpack.c.bf16 %v130_v32, %v129_v31  ;;  %v132_v38 = vld [vmem:[%s797_s3 + $0x58] sm:$0xff]  ;;  %v41_v40 = vld [vmem:[%s796_s1 + $0x70] sm:$0xff] }
   0xa   :  { %514 = vmatpush3.bf16.msra.mxu1 %v513_v18  ;;  %v504_v39 = vpack.c.bf16 %v40_v35, %v39_v34  ;;  %v42_v41 = vld [vmem:[%s796_s1 + $0x78] sm:$0xff]  ;;  %v525_v42 = vpack.c.bf16 %v132_v38, %v131_v37  ;;  %v133_v43 = vld [vmem:[%s797_s3 + $0x60] sm:$0xff]  ;;  %v134_v44 = vld [vmem:[%s797_s3 + $0x68] sm:$0xff] }
   0xb   :  { %515 = vmatprep.subr.bf16.mxu1 %v564_v0  ;;  %v507_v45 = vpack.c.bf16 %v42_v41, %v41_v40  ;;  %v528_v46 = vpack.c.bf16 %v134_v44, %v133_v43  ;;  %v26_v47 = vld [vmem:[%s798_s0] sm:$0xff]  ;;  %v135_v48 = vld [vmem:[%s797_s3 + $0x70] sm:$0xff]  ;;  %v136_v49 = vld [vmem:[%s797_s3 + $0x78] sm:$0xff] }
   0xc   :  { %493 = vmatpush3.bf16.msra.mxu0 %v492_v14  ;;  %v531_v50 = vpack.c.bf16 %v136_v49, %v135_v48  ;;  %v215_v51 = vld [vmem:[%s799_s5] sm:$0xff]  ;;  %v216_v52 = vld [vmem:[%s799_s5 + $0x8] sm:$0xff]  ;;  %v217_v53 = vld [vmem:[%s799_s5 + $0x10] sm:$0xff] }
   0xd   :  { %494 = vmatprep.subr.bf16.mxu0 %v564_v0  ;;  %v534_v54 = vpack.c.bf16 %v216_v52, %v215_v51  ;;  %v218_v55 = vld [vmem:[%s799_s5 + $0x18] sm:$0xff]  ;;  %v219_v57 = vld [vmem:[%s799_s5 + $0x20] sm:$0xff]  ;;  %v220_v58 = vld [vmem:[%s799_s5 + $0x28] sm:$0xff] }
   0xe   :  { %517 = vmatpush3.bf16.msra.mxu1 %v516_v24  ;;  %v537_v56 = vpack.c.bf16 %v218_v55, %v217_v53  ;;  %v540_v59 = vpack.c.bf16 %v220_v58, %v219_v57  ;;  %v221_v60 = vld [vmem:[%s799_s5 + $0x30] sm:$0xff]  ;;  %v222_v61 = vld [vmem:[%s799_s5 + $0x38] sm:$0xff]  ;;  %v223_v63 = vld [vmem:[%s799_s5 + $0x40] sm:$0xff] }
   0xf   :  { %518 = vmatprep.subr.bf16.mxu1 %v564_v0  ;;  %v543_v62 = vpack.c.bf16 %v222_v61, %v221_v60  ;;  %v224_v1 = vld [vmem:[%s799_s5 + $0x48] sm:$0xff]  ;;  %v225_v3 = vld [vmem:[%s799_s5 + $0x50] sm:$0xff]  ;;  %v227_v6 = vld [vmem:[%s799_s5 + $0x60] sm:$0xff] }
  0x10   :  { %496 = vmatpush3.bf16.msra.mxu0 %v495_v21  ;;  %v546_v2 = vpack.c.bf16 %v224_v1, %v223_v63  ;;  %v228_v7 = vld [vmem:[%s799_s5 + $0x68] sm:$0xff]  ;;  %v326_v9 = vld [vmem:[%s800_s2] ss:$0 sm:$0xff]  ;;  %v229_v14 = vld [vmem:[%s799_s5 + $0x70] sm:$0xff]  ;;  %v308_v21 = vlaneseq }
  0x11   :  { %497 = vmatprep.subr.bf16.mxu0 %v564_v0  ;;  %v552_v8 = vpack.c.bf16 %v228_v7, %v227_v6  ;;  %v230_v15 = vld [vmem:[%s799_s5 + $0x78] sm:$0xff]  ;;  %v328_v23 = vld [vmem:[%s802_s6] ss:$0 sm:$0xff] }
  0x12   :  { %520 = vmatpush3.bf16.msra.mxu1 %v519_v30  ;;  %v555_v16 = vpack.c.bf16 %v230_v15, %v229_v14  ;;  %v309_v22 = vand.u32 127, %v308_v21 }
  0x13   :  { %521 = vmatprep.subr.bf16.mxu1 %v564_v0 }
  0x14   :  { %499 = vmatpush3.bf16.msra.mxu0 %v498_v27  ;;  %vm310_vm1 = vcmp.lt.s32.totalorder %v309_v22, 8 }
  0x15   :  { %500 = vmatprep.subr.bf16.mxu0 %v564_v0 }
  0x16   :  { %523 = vmatpush3.bf16.msra.mxu1 %v522_v36 }
  0x17   :  { %524 = vmatprep.subr.bf16.mxu1 %v564_v0 }
  0x18   :  { %502 = vmatpush3.bf16.msra.mxu0 %v501_v33 }
  0x19   :  { %503 = vmatprep.subr.bf16.mxu0 %v564_v0 }
  0x1a   :  { %526 = vmatpush3.bf16.msra.mxu1 %v525_v42 }
  0x1b   :  { %527 = vmatprep.subr.bf16.mxu1 %v564_v0 }
  0x1c   :  { %505 = vmatpush3.bf16.msra.mxu0 %v504_v39 }
  0x1d   :  { %506 = vmatprep.subr.bf16.mxu0 %v564_v0 }
  0x1e   :  { %529 = vmatpush3.bf16.msra.mxu1 %v528_v46 }
  0x1f   :  { %530 = vmatprep.subr.bf16.mxu1 %v564_v0 }
  0x20   :  { %508 = vmatpush3.bf16.msra.mxu0 %v507_v45 }
  0x21   :  { %533 = vmatprep.subr.bf16.mxu0 %v564_v0 }
  0x22   :  { %532 = vmatpush3.bf16.msra.mxu1 %v531_v50 }
  0x23   :  { %413 = vmatmul.mubr.f32.vlgmr.msra.gmra.mrb[0].mxu0 %v26_v47 }
  0x24   :  { %482 = vmatprep.mubr.msk.f32.mxu0 %vm565_vm0, %v566_v4  ;;  %535 = vmatpush3.bf16.msra.mxu0 %v534_v54  ;;  %v226_v4 = vld [vmem:[%s799_s5 + $0x58] sm:$0xff] }
  0x25   :  { %536 = vmatprep.subr.bf16.mxu0 %v564_v0  ;;  %v549_v5 = vpack.c.bf16 %v226_v4, %v225_v3 }
  0x28   :  { %538 = vmatpush3.bf16.msra.mxu0 %v537_v56 }
  0x29   :  { %539 = vmatprep.subr.bf16.mxu0 %v564_v0 }
  0x2c   :  { %541 = vmatpush3.bf16.msra.mxu0 %v540_v59 }
  0x2d   :  { %542 = vmatprep.subr.bf16.mxu0 %v564_v0 }
  0x30   :  { %544 = vmatpush3.bf16.msra.mxu0 %v543_v62 }
  0x31   :  { %545 = vmatprep.subr.bf16.mxu0 %v564_v0 }
  0x34   :  { %547 = vmatpush3.bf16.msra.mxu0 %v546_v2 }
  0x35   :  { %548 = vmatprep.subr.bf16.mxu0 %v564_v0 }
  0x38   :  { %550 = vmatpush3.bf16.msra.mxu0 %v549_v5 }
  0x39   :  { %551 = vmatprep.subr.bf16.mxu0 %v564_v0 }
  0x3c   :  { %553 = vmatpush3.bf16.msra.mxu0 %v552_v8 }
  0x3d   :  { %554 = vmatprep.subr.bf16.mxu0 %v564_v0  ;;  %v327_v0 = vld [vmem:[%s801_s4] ss:$0 sm:$0xff] }
  0x40   :  { %556 = vmatpush3.bf16.msra.mxu0 %v555_v16 }
  0xf6   :  { %v116_v10 = vpop.f32.mrb[0].mxu0 }
  0xf7   :  { %v117_v11 = vadd.f32 %v326_v9, %v116_v10  ;;  %v414_v12 = vpop.f32.mrb[1].mxu0 }
  0xf9   :  { %v120_v13 = vmax.f32 %v117_v11, 0.0 }
  0xfb   :  { %448 = vmatmul.mubr.f32.vlgmr.msra.gmra.mrb[0].mxu1 %v120_v13 }
 0x1ce   :  { %v210_v17 = vpop.f32.mrb[0].mxu1 }
 0x1cf   :  { %v211_v18 = vadd.f32 %v327_v0, %v210_v17  ;;  %v449_v19 = vpop.f32.mrb[1].mxu1 }
 0x1d1   :  { %v214_v20 = vmax.f32 %v211_v18, 0.0 }
 0x1d3   :  { %483 = vmatmul.mubr.f32.vlgmr.msra.gmra.mrb[2].mxu0 %v214_v20 }
 0x2a6   :  { %v304_v24 = vpop.f32.mrb[2].mxu0 }
 0x2a7   :  { %v305_v25 = vadd.f32 %v328_v23, %v304_v24  ;;  %v484_v26 = vpop.f32.mrb[3].mxu0 }
 0x2a9   :  { %v311_v27 = vsel %vm310_vm1, %v305_v25, -1e+30 }
 0x2aa   :  { %312 = vmax.xlane.f32.xlu0 %v311_v27 }
 0x337   :  { %v313_v28 = vpop.xlane.xlu0 %312 }
 0x338   :  { %v314_v29 = vsub.f32 %v311_v27, %v313_v28 }
 0x33a   :  { %v315_v30 = vmul.f32 1.442695, %v314_v29 }
 0x33c   :  { %560 = vpow2.f32 %v315_v30 }
 0x346   :  { %v561_v31 = vpop.eup %560 }
 0x347   :  { %317 = vadd.xlane.f32.xlu0 %v561_v31 }
 0x3d4   :  { %v318_v32 = vpop.xlane.xlu0 %317 }
 0x3d5   :  { %562 = vrcp.f32 %v318_v32 }
 0x3df   :  { %v563_v33 = vpop.eup %562 }
 0x3e0   :  { %v320_v34 = vmul.f32 %v563_v33, %v561_v31 }
 0x3e2   :  { %321 = vst [vmem:[%s803_s7] sm:$0xff] %v320_v34 }

</bundles_post_ra>
